<compile_context>
chip_gen: v5e
topology: v5e:2x2
jax: 0.10.0
libtpu: 0.0.40
codegen_flags: <defaults>
</compile_context>

<pallas_src>
import functools

import jax
import jax.numpy as jnp
from jax.experimental import pallas as pl
from jax.experimental.pallas import tpu as pltpu

LN_EPS = 1e-5


def _dpb_kernel(residual, pos_dim, out_rows, b_ref, p_ref, o_ref):
    """Transposed DynamicPosBias forward.

    b_ref : [2, T]           biases (features on sublanes, pairs on lanes)
    p_ref : [R, 2 + 3P + 10] packed parameter slab (see _pack_params)
    o_ref : [out_rows, T]    out_rows = num_heads rounded up to a multiple of 8
    """
    P = pos_dim
    v0 = 2 + 3 * P  # column where the packed vectors (biases / gammas / betas) start

    def w_block(col0, in_dim, rows):
        # Weight slice stored transposed ([out, in]) -> feeds the MXU directly.
        return p_ref[0:rows, col0:col0 + in_dim]            # [rows, in_dim]

    def vcol(j, rows):
        # One packed vector as a [rows, 1] column; broadcasts across lanes.
        return p_ref[0:rows, v0 + j:v0 + j + 1]

    def linear(h, col0, in_dim, rows, bias_j):
        # y[o, t] = sum_i wT[o, i] * h[i, t] + b[o]   (MXU, f32 accumulate)
        y = jnp.dot(w_block(col0, in_dim, rows), h,
                    preferred_element_type=jnp.float32)      # [rows, T]
        return y + vcol(bias_j, rows)

    def layernorm(h, gamma_j, beta_j):
        mu = jnp.mean(h, axis=0, keepdims=True)               # sublane reduce (XLU)
        var = jnp.mean((h - mu) ** 2, axis=0, keepdims=True)
        inv = jax.lax.rsqrt(var + LN_EPS)                     # EUP
        return (h - mu) * inv * vcol(gamma_j, P) + vcol(beta_j, P)

    def block(h, col0, rows, gamma_j, beta_j, bias_j):
        z = jnp.maximum(layernorm(h, gamma_j, beta_j), 0.0)
        return linear(z, col0, P, rows, bias_j)

    x = b_ref[...].astype(jnp.float32)                        # [2, T]
    pos = linear(x, 0, 2, P, 0)                               # pos_proj -> [P, T]

    if residual:
        pos = pos + block(pos, 2,         P, 1, 2, 3)         # pos1
        pos = pos + block(pos, 2 + P,     P, 4, 5, 6)         # pos2
        pos = block(pos, 2 + 2 * P, out_rows, 7, 8, 9)        # pos3 -> [out_rows, T]
    else:
        pos = block(pos, 2,         P, 1, 2, 3)
        pos = block(pos, 2 + P,     P, 4, 5, 6)
        pos = block(pos, 2 + 2 * P, out_rows, 7, 8, 9)

    o_ref[...] = pos.astype(o_ref.dtype)


def make_params(key, dim, num_heads):
    """Deterministic synthetic parameters with the same shapes as the PyTorch module.

    Linear weights are stored JAX-style as [in_features, out_features]
    (kernel computes x @ W + b, equivalent to PyTorch's x @ W.T + b).
    """
    pos_dim = dim // 4
    ks = jax.random.split(key, 4)

    def lin(k, fan_in, fan_out):
        w = 0.02 * jax.random.normal(k, (fan_in, fan_out), jnp.float32)
        b = 0.01 * jax.random.normal(jax.random.fold_in(k, 1), (1, fan_out), jnp.float32)
        return w, b

    w0, b0 = lin(ks[0], 2, pos_dim)          # pos_proj
    w1, b1 = lin(ks[1], pos_dim, pos_dim)    # pos1 linear
    w2, b2 = lin(ks[2], pos_dim, pos_dim)    # pos2 linear
    w3, b3 = lin(ks[3], pos_dim, num_heads)  # pos3 linear
    ln = lambda d: (jnp.ones((1, d), jnp.float32), jnp.zeros((1, d), jnp.float32))
    g1, be1 = ln(pos_dim)
    g2, be2 = ln(pos_dim)
    g3, be3 = ln(pos_dim)
    return dict(w0=w0, b0=b0,
                g1=g1, be1=be1, w1=w1, b1=b1,
                g2=g2, be2=be2, w2=w2, b2=b2,
                g3=g3, be3=be3, w3=w3, b3=b3)


def _pack_params(params, pos_dim, num_heads, n_rows):
    """Pack all parameters into one [n_rows, 2 + 3P + 10] f32 slab (single DMA).

    Columns:  [w0^T | w1^T | w2^T | w3^T | b0 g1 be1 b1 g2 be2 b2 g3 be3 b3]
    Weights are stored transposed ([out, in]) so the kernel can feed the MXU
    with one contiguous [rows, in] slice per linear.  Rows num_heads..n_rows-1
    of w3^T / b3 stay zero, making the padded output rows exactly zero.
    """
    P, H = pos_dim, num_heads
    C = 2 + 3 * P + 10
    slab = jnp.zeros((n_rows, C), jnp.float32)

    def put(s, col0, m):
        r, c = m.shape
        return s.at[0:r, col0:col0 + c].set(m.astype(jnp.float32))

    slab = put(slab, 0,         params["w0"].T)   # [P, 2]
    slab = put(slab, 2,         params["w1"].T)   # [P, P]
    slab = put(slab, 2 + P,     params["w2"].T)   # [P, P]
    slab = put(slab, 2 + 2 * P, params["w3"].T)   # [H, P]
    v0 = 2 + 3 * P
    vec_keys = ("b0", "g1", "be1", "b1", "g2", "be2", "b2", "g3", "be3", "b3")
    for j, k in enumerate(vec_keys):
        v = params[k].reshape(-1)
        slab = put(slab, v0 + j, v[:, None])
    return slab


def dynamic_pos_bias(biases, params, *, residual=True, tile_n=4096):
    """biases: [N, 2] -> [N, num_heads]."""
    N = biases.shape[0]
    P = params["w1"].shape[0]          # pos_dim
    H = params["w3"].shape[1]          # num_heads
    H_pad = ((H + 7) // 8) * 8         # full-vreg (unmasked) stores
    R = max(P, H_pad)
    C = 2 + 3 * P + 10

    # ---- lane tiling -------------------------------------------------------
    # Big tiles amortize the ~0.35 us per-grid-step overhead; when N needs
    # more than one tile the grid has >= 2 "parallel" steps (v7x dual-TC) and
    # tiles are balanced so the final tile carries no extra padding waste.
    n_lane = pl.cdiv(max(N, 1), 128) * 128
    cap = max(128, (int(tile_n) // 128) * 128)
    if n_lane <= cap:
        tile = n_lane
        n_tiles = 1
    else:
        n_tiles = pl.cdiv(n_lane, cap)
        tile = pl.cdiv(pl.cdiv(n_lane, n_tiles), 128) * 128
    N_pad = n_tiles * tile

    # Transpose so N is lane-minor; pad the lane axis host-side (padded columns
    # compute harmless finite garbage / zeros that are sliced off below).
    biases_t = jnp.pad(jnp.transpose(biases.astype(jnp.float32)),
                       ((0, 0), (0, N_pad - N)))                  # [2, N_pad]
    slab = _pack_params(params, P, H, R)                          # [R, C]

    kernel = functools.partial(_dpb_kernel, residual, P, H_pad)
    out_t = pl.pallas_call(
        kernel,
        out_shape=jax.ShapeDtypeStruct((H_pad, N_pad), jnp.float32),
        grid_spec=pltpu.PrefetchScalarGridSpec(
            num_scalar_prefetch=0,
            grid=(n_tiles,),
            in_specs=[
                pl.BlockSpec((2, tile), lambda i: (0, i)),        # biases^T tile
                pl.BlockSpec((R, C), lambda i: (0, 0)),           # packed params
            ],
            out_specs=pl.BlockSpec((H_pad, tile), lambda i: (0, i)),
        ),
        compiler_params=pltpu.CompilerParams(
            dimension_semantics=("parallel",),
            vmem_limit_bytes=32 * 1024 * 1024),                   # safe on v7x too
    )(biases_t, slab)

    # TODO(synk): downstream attention consumers could take the [H, N] layout
    # directly and skip this trailing transpose.
    return out_t[:H, :N].T                                        # [N, H]


def dynamic_pos_bias_ref(biases, params, *, residual=True):
    """Pure-JAX reference mirroring the PyTorch forward."""
    def ln(x, g, b):
        mu = jnp.mean(x, -1, keepdims=True)
        var = jnp.mean((x - mu) ** 2, -1, keepdims=True)
        return (x - mu) / jnp.sqrt(var + LN_EPS) * g + b

    def blk(p, g, be, w, b):
        return jnp.maximum(ln(p, g, be), 0.0) @ w + b

    pos = biases @ params["w0"] + params["b0"]
    if residual:
        pos = pos + blk(pos, params["g1"], params["be1"], params["w1"], params["b1"])
        pos = pos + blk(pos, params["g2"], params["be2"], params["w2"], params["b2"])
        pos = blk(pos, params["g3"], params["be3"], params["w3"], params["b3"])
    else:
        pos = blk(pos, params["g1"], params["be1"], params["w1"], params["b1"])
        pos = blk(pos, params["g2"], params["be2"], params["w2"], params["b2"])
        pos = blk(pos, params["g3"], params["be3"], params["w3"], params["b3"])
    return pos


if __name__ == "__main__":
    dim = 32            # => pos_dim = 8
    num_heads = 4
    Wh = Ww = 7
    N = (2 * Wh - 1) * (2 * Ww - 1)   # 169 — realistic, NOT a multiple of 128

    key = jax.random.PRNGKey(0)
    k_bias, k_params = jax.random.split(key)
    params = make_params(k_params, dim, num_heads)

    # Case 1: realistic small N, single tile.
    biases = jax.random.normal(k_bias, (N, 2), jnp.float32)
    for residual in (True, False):
        out = dynamic_pos_bias(biases, params, residual=residual)
        out = jax.block_until_ready(out)
        ref = dynamic_pos_bias_ref(biases, params, residual=residual)
        assert out.shape == (N, num_heads)
        assert jnp.allclose(out, ref, atol=2e-5, rtol=1e-4), (
            f"mismatch vs JAX reference (residual={residual})")

    # Case 2: exercise the multi-tile / padded-tail path (forces 3 grid steps).
    N2 = 300
    biases2 = jax.random.normal(jax.random.fold_in(k_bias, 7), (N2, 2), jnp.float32)
    out2 = dynamic_pos_bias(biases2, params, residual=True, tile_n=128)
    out2 = jax.block_until_ready(out2)
    ref2 = dynamic_pos_bias_ref(biases2, params, residual=True)
    assert out2.shape == (N2, num_heads)
    assert jnp.allclose(out2, ref2, atol=2e-5, rtol=1e-4), "mismatch (multi-tile)"

    print("KERNEL_OK")
</pallas_src>

<mosaic_0001>
module attributes {stable_mosaic.version = 11 : i64} {
  func.func @_dpb_kernel(%arg0: i32, %arg1: memref<2x256xf32, #tpu.memory_space<vmem>>, %arg2: memref<8x36xf32, #tpu.memory_space<vmem>>, %arg3: memref<8x256xf32, #tpu.memory_space<vmem>>) attributes {dimension_semantics = [#tpu.dimension_semantics<parallel>], iteration_bounds = array<i64: 1>, scalar_prefetch = 0 : i64, scratch_operands = 0 : i64, tpu.core_type = #tpu.core_type<tc>, window_params = [{transform_indices = @transform_0, window_bounds = array<i64: 2, 256>}, {pipeline_mode = #tpu.pipeline_mode<synchronous>, transform_indices = @transform_1, window_bounds = array<i64: 8, 36>}, {transform_indices = @transform_2, window_bounds = array<i64: 8, 256>}]} {
    %c0 = arith.constant 0 : index
    %c0_0 = arith.constant 0 : index
    %0 = vector.load %arg1[%c0, %c0_0] : memref<2x256xf32, #tpu.memory_space<vmem>>, vector<2x256xf32>
    %c0_1 = arith.constant 0 : index
    %c0_2 = arith.constant 0 : index
    %1 = vector.load %arg2[%c0_1, %c0_2] : memref<8x36xf32, #tpu.memory_space<vmem>>, vector<8x2xf32>
    %cst = arith.constant dense<0.000000e+00> : vector<8x256xf32>
    %2 = tpu.matmul %1, %0, %cst {dimension_numbers = #tpu.dot_dimension_numbers<[1], [0], [0], [1], [0, 0, 1, 1], [], []>} : vector<8x2xf32>, vector<2x256xf32>, vector<8x256xf32> -> vector<8x256xf32>
    %c0_3 = arith.constant 0 : index
    %c26 = arith.constant 26 : index
    %3 = vector.load %arg2[%c0_3, %c26] : memref<8x36xf32, #tpu.memory_space<vmem>>, vector<8x1xf32>
    %4 = vector.broadcast %3 : vector<8x1xf32> to vector<8x256xf32>
    %5 = arith.addf %2, %4 : vector<8x256xf32>
    %cst_4 = arith.constant dense<0.000000e+00> : vector<256xf32>
    %6 = vector.multi_reduction <add>, %5, %cst_4 [0] : vector<8x256xf32> to vector<256xf32>
    %7 = vector.shape_cast %6 : vector<256xf32> to vector<1x256xf32>
    %cst_5 = arith.constant 8.000000e+00 : f32
    %8 = vector.broadcast %cst_5 : f32 to vector<1x256xf32>
    %9 = arith.divf %7, %8 : vector<1x256xf32>
    %10 = vector.broadcast %9 : vector<1x256xf32> to vector<8x256xf32>
    %11 = arith.subf %5, %10 : vector<8x256xf32>
    %12 = arith.mulf %11, %11 : vector<8x256xf32>
    %cst_6 = arith.constant dense<0.000000e+00> : vector<256xf32>
    %13 = vector.multi_reduction <add>, %12, %cst_6 [0] : vector<8x256xf32> to vector<256xf32>
    %14 = vector.shape_cast %13 : vector<256xf32> to vector<1x256xf32>
    %cst_7 = arith.constant 8.000000e+00 : f32
    %15 = vector.broadcast %cst_7 : f32 to vector<1x256xf32>
    %16 = arith.divf %14, %15 : vector<1x256xf32>
    %cst_8 = arith.constant 9.99999974E-6 : f32
    %17 = vector.broadcast %cst_8 : f32 to vector<1x256xf32>
    %18 = arith.addf %16, %17 : vector<1x256xf32>
    %19 = math.rsqrt %18 : vector<1x256xf32>
    %20 = vector.broadcast %9 : vector<1x256xf32> to vector<8x256xf32>
    %21 = arith.subf %5, %20 : vector<8x256xf32>
    %22 = vector.broadcast %19 : vector<1x256xf32> to vector<8x256xf32>
    %23 = arith.mulf %21, %22 : vector<8x256xf32>
    %c0_9 = arith.constant 0 : index
    %c27 = arith.constant 27 : index
    %24 = vector.load %arg2[%c0_9, %c27] : memref<8x36xf32, #tpu.memory_space<vmem>>, vector<8x1xf32>
    %25 = vector.broadcast %24 : vector<8x1xf32> to vector<8x256xf32>
    %26 = arith.mulf %23, %25 : vector<8x256xf32>
    %c0_10 = arith.constant 0 : index
    %c28 = arith.constant 28 : index
    %27 = vector.load %arg2[%c0_10, %c28] : memref<8x36xf32, #tpu.memory_space<vmem>>, vector<8x1xf32>
    %28 = vector.broadcast %27 : vector<8x1xf32> to vector<8x256xf32>
    %29 = arith.addf %26, %28 : vector<8x256xf32>
    %cst_11 = arith.constant 0.000000e+00 : f32
    %30 = vector.broadcast %cst_11 : f32 to vector<8x256xf32>
    %31 = arith.maximumf %29, %30 : vector<8x256xf32>
    %c0_12 = arith.constant 0 : index
    %c2 = arith.constant 2 : index
    %32 = vector.load %arg2[%c0_12, %c2] : memref<8x36xf32, #tpu.memory_space<vmem>>, vector<8x8xf32>
    %cst_13 = arith.constant dense<0.000000e+00> : vector<8x256xf32>
    %33 = tpu.matmul %32, %31, %cst_13 {dimension_numbers = #tpu.dot_dimension_numbers<[1], [0], [0], [1], [0, 0, 1, 1], [], []>} : vector<8x8xf32>, vector<8x256xf32>, vector<8x256xf32> -> vector<8x256xf32>
    %c0_14 = arith.constant 0 : index
    %c29 = arith.constant 29 : index
    %34 = vector.load %arg2[%c0_14, %c29] : memref<8x36xf32, #tpu.memory_space<vmem>>, vector<8x1xf32>
    %35 = vector.broadcast %34 : vector<8x1xf32> to vector<8x256xf32>
    %36 = arith.addf %33, %35 : vector<8x256xf32>
    %37 = arith.addf %5, %36 : vector<8x256xf32>
    %cst_15 = arith.constant dense<0.000000e+00> : vector<256xf32>
    %38 = vector.multi_reduction <add>, %37, %cst_15 [0] : vector<8x256xf32> to vector<256xf32>
    %39 = vector.shape_cast %38 : vector<256xf32> to vector<1x256xf32>
    %cst_16 = arith.constant 8.000000e+00 : f32
    %40 = vector.broadcast %cst_16 : f32 to vector<1x256xf32>
    %41 = arith.divf %39, %40 : vector<1x256xf32>
    %42 = vector.broadcast %41 : vector<1x256xf32> to vector<8x256xf32>
    %43 = arith.subf %37, %42 : vector<8x256xf32>
    %44 = arith.mulf %43, %43 : vector<8x256xf32>
    %cst_17 = arith.constant dense<0.000000e+00> : vector<256xf32>
    %45 = vector.multi_reduction <add>, %44, %cst_17 [0] : vector<8x256xf32> to vector<256xf32>
    %46 = vector.shape_cast %45 : vector<256xf32> to vector<1x256xf32>
    %cst_18 = arith.constant 8.000000e+00 : f32
    %47 = vector.broadcast %cst_18 : f32 to vector<1x256xf32>
    %48 = arith.divf %46, %47 : vector<1x256xf32>
    %cst_19 = arith.constant 9.99999974E-6 : f32
    %49 = vector.broadcast %cst_19 : f32 to vector<1x256xf32>
    %50 = arith.addf %48, %49 : vector<1x256xf32>
    %51 = math.rsqrt %50 : vector<1x256xf32>
    %52 = vector.broadcast %41 : vector<1x256xf32> to vector<8x256xf32>
    %53 = arith.subf %37, %52 : vector<8x256xf32>
    %54 = vector.broadcast %51 : vector<1x256xf32> to vector<8x256xf32>
    %55 = arith.mulf %53, %54 : vector<8x256xf32>
    %c0_20 = arith.constant 0 : index
    %c30 = arith.constant 30 : index
    %56 = vector.load %arg2[%c0_20, %c30] : memref<8x36xf32, #tpu.memory_space<vmem>>, vector<8x1xf32>
    %57 = vector.broadcast %56 : vector<8x1xf32> to vector<8x256xf32>
    %58 = arith.mulf %55, %57 : vector<8x256xf32>
    %c0_21 = arith.constant 0 : index
    %c31 = arith.constant 31 : index
    %59 = vector.load %arg2[%c0_21, %c31] : memref<8x36xf32, #tpu.memory_space<vmem>>, vector<8x1xf32>
    %60 = vector.broadcast %59 : vector<8x1xf32> to vector<8x256xf32>
    %61 = arith.addf %58, %60 : vector<8x256xf32>
    %cst_22 = arith.constant 0.000000e+00 : f32
    %62 = vector.broadcast %cst_22 : f32 to vector<8x256xf32>
    %63 = arith.maximumf %61, %62 : vector<8x256xf32>
    %c0_23 = arith.constant 0 : index
    %c10 = arith.constant 10 : index
    %64 = vector.load %arg2[%c0_23, %c10] : memref<8x36xf32, #tpu.memory_space<vmem>>, vector<8x8xf32>
    %cst_24 = arith.constant dense<0.000000e+00> : vector<8x256xf32>
    %65 = tpu.matmul %64, %63, %cst_24 {dimension_numbers = #tpu.dot_dimension_numbers<[1], [0], [0], [1], [0, 0, 1, 1], [], []>} : vector<8x8xf32>, vector<8x256xf32>, vector<8x256xf32> -> vector<8x256xf32>
    %c0_25 = arith.constant 0 : index
    %c32 = arith.constant 32 : index
    %66 = vector.load %arg2[%c0_25, %c32] : memref<8x36xf32, #tpu.memory_space<vmem>>, vector<8x1xf32>
    %67 = vector.broadcast %66 : vector<8x1xf32> to vector<8x256xf32>
    %68 = arith.addf %65, %67 : vector<8x256xf32>
    %69 = arith.addf %37, %68 : vector<8x256xf32>
    %cst_26 = arith.constant dense<0.000000e+00> : vector<256xf32>
    %70 = vector.multi_reduction <add>, %69, %cst_26 [0] : vector<8x256xf32> to vector<256xf32>
    %71 = vector.shape_cast %70 : vector<256xf32> to vector<1x256xf32>
    %cst_27 = arith.constant 8.000000e+00 : f32
    %72 = vector.broadcast %cst_27 : f32 to vector<1x256xf32>
    %73 = arith.divf %71, %72 : vector<1x256xf32>
    %74 = vector.broadcast %73 : vector<1x256xf32> to vector<8x256xf32>
    %75 = arith.subf %69, %74 : vector<8x256xf32>
    %76 = arith.mulf %75, %75 : vector<8x256xf32>
    %cst_28 = arith.constant dense<0.000000e+00> : vector<256xf32>
    %77 = vector.multi_reduction <add>, %76, %cst_28 [0] : vector<8x256xf32> to vector<256xf32>
    %78 = vector.shape_cast %77 : vector<256xf32> to vector<1x256xf32>
    %cst_29 = arith.constant 8.000000e+00 : f32
    %79 = vector.broadcast %cst_29 : f32 to vector<1x256xf32>
    %80 = arith.divf %78, %79 : vector<1x256xf32>
    %cst_30 = arith.constant 9.99999974E-6 : f32
    %81 = vector.broadcast %cst_30 : f32 to vector<1x256xf32>
    %82 = arith.addf %80, %81 : vector<1x256xf32>
    %83 = math.rsqrt %82 : vector<1x256xf32>
    %84 = vector.broadcast %73 : vector<1x256xf32> to vector<8x256xf32>
    %85 = arith.subf %69, %84 : vector<8x256xf32>
    %86 = vector.broadcast %83 : vector<1x256xf32> to vector<8x256xf32>
    %87 = arith.mulf %85, %86 : vector<8x256xf32>
    %c0_31 = arith.constant 0 : index
    %c33 = arith.constant 33 : index
    %88 = vector.load %arg2[%c0_31, %c33] : memref<8x36xf32, #tpu.memory_space<vmem>>, vector<8x1xf32>
    %89 = vector.broadcast %88 : vector<8x1xf32> to vector<8x256xf32>
    %90 = arith.mulf %87, %89 : vector<8x256xf32>
    %c0_32 = arith.constant 0 : index
    %c34 = arith.constant 34 : index
    %91 = vector.load %arg2[%c0_32, %c34] : memref<8x36xf32, #tpu.memory_space<vmem>>, vector<8x1xf32>
    %92 = vector.broadcast %91 : vector<8x1xf32> to vector<8x256xf32>
    %93 = arith.addf %90, %92 : vector<8x256xf32>
    %cst_33 = arith.constant 0.000000e+00 : f32
    %94 = vector.broadcast %cst_33 : f32 to vector<8x256xf32>
    %95 = arith.maximumf %93, %94 : vector<8x256xf32>
    %c0_34 = arith.constant 0 : index
    %c18 = arith.constant 18 : index
    %96 = vector.load %arg2[%c0_34, %c18] : memref<8x36xf32, #tpu.memory_space<vmem>>, vector<8x8xf32>
    %cst_35 = arith.constant dense<0.000000e+00> : vector<8x256xf32>
    %97 = tpu.matmul %96, %95, %cst_35 {dimension_numbers = #tpu.dot_dimension_numbers<[1], [0], [0], [1], [0, 0, 1, 1], [], []>} : vector<8x8xf32>, vector<8x256xf32>, vector<8x256xf32> -> vector<8x256xf32>
    %c0_36 = arith.constant 0 : index
    %c35 = arith.constant 35 : index
    %98 = vector.load %arg2[%c0_36, %c35] : memref<8x36xf32, #tpu.memory_space<vmem>>, vector<8x1xf32>
    %99 = vector.broadcast %98 : vector<8x1xf32> to vector<8x256xf32>
    %100 = arith.addf %97, %99 : vector<8x256xf32>
    %c0_37 = arith.constant 0 : index
    %c0_38 = arith.constant 0 : index
    %101 = vector.load %arg3[%c0_37, %c0_38] : memref<8x256xf32, #tpu.memory_space<vmem>>, vector<8x256xf32>
    tpu.vector_store %arg3[%c0_37, %c0_38], %100 {strides = array<i32>} : memref<8x256xf32, #tpu.memory_space<vmem>>, vector<8x256xf32>,
    return
  }
  func.func @transform_0(%arg0: i32) -> (i32, i32) {
    %c0_i32 = arith.constant 0 : i32
    %c0_i32_0 = arith.constant 0 : i32
    return %c0_i32, %arg0 : i32, i32
  }
  func.func @transform_1(%arg0: i32) -> (i32, i32) {
    %c0_i32 = arith.constant 0 : i32
    %c0_i32_0 = arith.constant 0 : i32
    %c0_i32_1 = arith.constant 0 : i32
    return %c0_i32, %c0_i32_0 : i32, i32
  }
  func.func @transform_2(%arg0: i32) -> (i32, i32) {
    %c0_i32 = arith.constant 0 : i32
    %c0_i32_0 = arith.constant 0 : i32
    return %c0_i32, %arg0 : i32, i32
  }
}

</mosaic_0001>

<bundles_post_ra>
// kernel: tpu_custom_call.1
= control target key start
LH: loop header
LB: loop body
LE: loop exit
PB: predicated region body
PF: predicated region fallthrough
CT: control target
= control target key end

     0   :  { %7 = vsyncpa [#allocation3], 0  ;;  %s719_s0 = inlined_call_operand.hbm [shape: f32[2,256], index: 0, kind: input, shape index: {}]   ;;  %s720_s1 = inlined_call_operand.hbm [shape: f32[8,36], index: 1, kind: input, shape index: {}]   ;;  %s721_s2 = inlined_call_operand.hbm [shape: f32[8,256], index: 2, kind: output, shape index: {}]  }
   0x1   :  { %8 = vsyncpa [#allocation6], 0 }
   0x2   :  { %9 = vsyncpa [#allocation4], 0  ;;  %s15_s11 = sshll.u32 %s719_s0, 4  ;;  %s617_s12 = smov [#allocation2]   ;;  %s16_s11 = int_to_ptr.hbm [resolvable:$true] %s15_s11 }
   0x3   :  { %s17_s13 = sshll.u32 %s617_s12, 4  ;;  %s26_s16 = sshll.u32 %s720_s1, 4  ;;  %s18_s13 = int_to_ptr.vmem [resolvable:$true] %s17_s13  ;;  %s27_s16 = int_to_ptr.hbm [resolvable:$true] %s26_s16 }
   0x4   :  { %20 = dma.hbm_to_vmem [thread:$0]  %s16_s11, 64, %s18_s13, [#allocation3]  }
   0x5   :  { %s618_s17 = smov [#allocation5]  }
   0x6   :  { %s28_s18 = sshll.u32 %s618_s17, 4  ;;  %s29_s18 = int_to_ptr.vmem [resolvable:$true] %s28_s18 }
   0x7   :  { %31 = dma.hbm_to_vmem [thread:$0]  %s27_s16, 128, %s29_s18, [#allocation6]  }
   0x8   :  { %611 = dma.done.wait [#allocation3], 64  }
   0x9   :  { %612 = vsyncadd [#allocation3], 4294967232 }
   0xa   :  { %613 = dma.done.wait [#allocation6], 128  }
   0xb   :  { %614 = vsyncadd [#allocation6], 4294967168  ;;  %v619_v0 = vmov 26   ;;  %v620_v1 = vmov 28   ;;  %v40_v2 = vld [vmem:[#allocation2] sm:$0xf] }
   0xc   :  { %514 = vset.pattern.permute.xlu0 %v619_v0  ;;  %516 = vset.pattern.permute.xlu1 %v620_v1  ;;  %v655_v3 = vld [vmem:[#allocation5] sm:$0xff]  ;;  %48 = vst [vmem:[#allocation1] ss:$4 sm:$0xff] %v40_v2  ;;  %vm54_vm0 = vcmask 1041408   ;;  %vm51_vm1 = vcmask 15360   ;;  %v621_v6 = vmov 27  }
   0xd   :  { %44 = vperm.xlu0 %514, %v655_v3   ;;  %171 = vperm.xlu1 %516, %v655_v3   ;;  %s622_s0 = smov 126   ;;  %v623_v7 = vmov 8.0   ;;  %v624_v51 = vmov 29   ;;  %v625_v52 = vmov 31   ;;  %v626_v56 = vmov 30   ;;  %s627_s1 = smov 118  }
   0xe   :  { %525 = vrcp.f32 %v623_v7  ;;  %517 = vset.pattern.permute.xlu2 %v624_v51  ;;  %vm184_vm9 = vcmask 64512   ;;  %s631_s19 = smov 110   ;;  %s633_s20 = smov [#allocation7]  }
   0xf   :  { %179 = vperm.xlu2 %517, %v655_v3   ;;  %s474_s21 = sshll.u32 %s633_s20, 4  ;;  %s476_s24 = sshll.u32 %s721_s2, 4  ;;  %s475_s21 = int_to_ptr.vmem [resolvable:$true] %s474_s21  ;;  %s477_s24 = int_to_ptr.hbm [resolvable:$true] %s476_s24 }
  0x13   :  { %v49_v4 = vld.sshfl [vmem:[#allocation1] sm:$0xff pattern:$0x73625140]  ;;  %v50_v5 = vld.sshfl [vmem:[#allocation1 + $0x8] sm:$0xff pattern:$0x73625140] }
  0x14   :  { %487 = vmatpush.msk.msra.mxu0 %vm54_vm0, %v49_v4  ;;  %489 = vmatpush.msk.msra.mxu1 %vm54_vm0, %v50_v5  ;;  %v526_v8 = vpop.eup %525 }
  0x15   :  { %488 = vmatmul.msk.f32.vlgmr.msra.gmra.mxu0 %vm51_vm1, %v655_v3  ;;  %490 = vmatmul.msk.f32.vlgmr.msra.gmra.mxu1 %vm51_vm1, %v655_v3  ;;  %v112_v9 = vmul.f32 8.0, %v526_v8  ;;  %vm116_vm2 = vweird.f32 %v526_v8 }
  0x16   :  { %515 = vset.pattern.permute.xlu0 %v621_v6  ;;  %182 = vrot.lane.b32.xlu1 %v655_v3, %s622_s0 }
  0x17   :  { %165 = vperm.xlu0 %515, %v655_v3   ;;  %v113_v13 = vsub.f32 1.0, %v112_v9  ;;  %519 = vset.pattern.permute.xlu1 %v625_v52 }
  0x18   :  { %518 = vset.pattern.permute.xlu2 %v626_v56 }
  0x19   :  { %v114_v18 = vmul.f32 %v526_v8, %v113_v13  ;;  %286 = vperm.xlu2 %518, %v655_v3  }
  0x1b   :  { %v115_v23 = vadd.f32 %v526_v8, %v114_v18 }
  0x1d   :  { %v671_v28 = vsel %vm116_vm2, %v526_v8, %v115_v23 }
  0x1e   :  { %292 = vperm.xlu1 %519, %v655_v3  }
  0x21   :  { %303 = vrot.lane.b32.xlu2 %v655_v3, %s627_s1 }
  0x7f   :  { %v45_v10 = vpop.permute.xlu0 %44  ;;  %v172_v1 = vpop.permute.xlu1 %171 }
  0x89   :  { %v166_v6 = vpop.permute.xlu0 %165 }
  0x92   :  { %v76_v11 = vpop.f32.mrf.mxu0  ;;  %v96_v12 = vpop.f32.mrf.mxu1 }
  0x93   :  { %v663_v14 = vadd.f32 %v76_v11, %v45_v10  ;;  %v665_v15 = vadd.f32 %v96_v12, %v45_v10 }
  0x95   :  { %v99_v16 = vrot.slane %v663_v14, 4  ;;  %v105_v17 = vrot.slane %v665_v15, 4 }
  0x97   :  { %v100_v19 = vadd.f32 %v99_v16, %v663_v14  ;;  %v106_v20 = vadd.f32 %v105_v17, %v665_v15  ;;  %v183_v17 = vpop.permute.xlu1 %182 }
  0x99   :  { %v101_v21 = vrot.slane %v100_v19, 2  ;;  %v107_v22 = vrot.slane %v106_v20, 2 }
  0x9b   :  { %v102_v24 = vadd.f32 %v101_v21, %v100_v19  ;;  %v108_v25 = vadd.f32 %v107_v22, %v106_v20  ;;  %v180_v20 = vpop.permute.xlu2 %179 }
  0x9d   :  { %v103_v26 = vrot.slane %v102_v24, 1  ;;  %v109_v27 = vrot.slane %v108_v25, 1 }
  0x9f   :  { %v104_v29 = vadd.f32 %v103_v26, %v102_v24  ;;  %v110_v30 = vadd.f32 %v109_v27, %v108_v25 }
  0xa1   :  { %v118_v31 = vmul.f32 %v671_v28, %v104_v29  ;;  %v119_v32 = vmul.f32 %v671_v28, %v110_v30 }
  0xa3   :  { %v120_v33 = vsub.f32 %v663_v14, %v118_v31  ;;  %v121_v34 = vsub.f32 %v665_v15, %v119_v32 }
  0xa5   :  { %v122_v35 = vmul.f32 %v120_v33, %v120_v33  ;;  %v123_v36 = vmul.f32 %v121_v34, %v121_v34 }
  0xa7   :  { %v124_v37 = vrot.slane %v122_v35, 4  ;;  %v130_v38 = vrot.slane %v123_v36, 4 }
  0xa9   :  { %v125_v39 = vadd.f32 %v124_v37, %v122_v35  ;;  %v131_v40 = vadd.f32 %v130_v38, %v123_v36 }
  0xab   :  { %v126_v41 = vrot.slane %v125_v39, 2  ;;  %v132_v42 = vrot.slane %v131_v40, 2 }
  0xad   :  { %v127_v43 = vadd.f32 %v126_v41, %v125_v39  ;;  %v133_v44 = vadd.f32 %v132_v42, %v131_v40 }
  0xaf   :  { %v128_v45 = vrot.slane %v127_v43, 1  ;;  %v134_v46 = vrot.slane %v133_v44, 1 }
  0xb1   :  { %v129_v47 = vadd.f32 %v128_v45, %v127_v43  ;;  %v135_v48 = vadd.f32 %v134_v46, %v133_v44 }
  0xb3   :  { %v136_v49 = vmul.f32 %v129_v47, %v671_v28  ;;  %v137_v50 = vmul.f32 %v135_v48, %v671_v28 }
  0xb5   :  { %v138_v53 = vadd.f32 1e-05, %v136_v49  ;;  %v139_v54 = vadd.f32 1e-05, %v137_v50 }
  0xb7   :  { %527 = vrsqrt.f32 %v138_v53  ;;  %vm146_vm5 = vweird.f32 %v138_v53  ;;  %vm156_vm7 = vweird.f32 %v139_v54 }
  0xb8   :  { %529 = vrsqrt.f32 %v139_v54 }
  0xbd   :  { %v528_v55 = vpop.eup %527 }
  0xbe   :  { %v530_v57 = vpop.eup %529  ;;  %v141_v58 = vmul.f32 %v528_v55, %v138_v53  ;;  %vm147_vm3 = vweird.f32 %v528_v55 }
  0xbf   :  { %v151_v59 = vmul.f32 %v530_v57, %v139_v54  ;;  %vm157_vm4 = vweird.f32 %v530_v57  ;;  %vm148_vm6 = vmor %vm146_vm5, %vm147_vm3 }
  0xc0   :  { %v142_v60 = vmul.f32 %v528_v55, %v141_v58  ;;  %vm158_vm8 = vmor %vm156_vm7, %vm157_vm4  ;;  %v628_v58 = vmov 32  }
  0xc1   :  { %v152_v61 = vmul.f32 %v530_v57, %v151_v59  ;;  %520 = vset.pattern.permute.xlu0 %v628_v58  ;;  %v629_v59 = vmov 33  }
  0xc2   :  { %v143_v62 = vmul.f32 0.5, %v142_v60  ;;  %521 = vset.pattern.permute.xlu1 %v629_v59  ;;  %300 = vperm.xlu0 %520, %v655_v3  }
  0xc3   :  { %v153_v63 = vmul.f32 0.5, %v152_v61  ;;  %406 = vperm.xlu1 %521, %v655_v3  }
  0xc4   :  { %v144_v0 = vsub.f32 1.5, %v143_v62  ;;  %v630_v62 = vmov 34  }
  0xc5   :  { %v154_v2 = vsub.f32 1.5, %v153_v63  ;;  %522 = vset.pattern.permute.xlu2 %v630_v62 }
  0xc6   :  { %v145_v4 = vmul.f32 %v528_v55, %v144_v0  ;;  %412 = vperm.xlu2 %522, %v655_v3  }
  0xc7   :  { %v155_v5 = vmul.f32 %v530_v57, %v154_v2 }
  0xc8   :  { %v149_v7 = vsel %vm148_vm6, %v528_v55, %v145_v4 }
  0xc9   :  { %v159_v8 = vsel %vm158_vm8, %v530_v57, %v155_v5  ;;  %v160_v9 = vmul.f32 %v149_v7, %v120_v33 }
  0xca   :  { %v161_v10 = vmul.f32 %v159_v8, %v121_v34 }
  0xcb   :  { %v168_v11 = vmul.f32 %v166_v6, %v160_v9  ;;  %423 = vrot.lane.b32.xlu1 %v655_v3, %s631_s19  ;;  %v287_v9 = vpop.permute.xlu2 %286 }
  0xcc   :  { %v169_v12 = vmul.f32 %v166_v6, %v161_v10 }
  0xcd   :  { %v174_v13 = vadd.f32 %v172_v1, %v168_v11 }
  0xce   :  { %v175_v16 = vadd.f32 %v172_v1, %v169_v12 }
  0xcf   :  { %v176_v18 = vmax.f32 %v174_v13, 0.0 }
  0xd0   :  { %v177_v19 = vmax.f32 %v175_v16, 0.0 }
  0xd1   :  { %202 = vmatpush.msra.mxu2 %v176_v18 }
  0xd2   :  { %222 = vmatpush.msra.mxu3 %v177_v19  ;;  %491 = vmatmul.msk.f32.vlgmr.msra.gmra.mxu2 %vm184_vm9, %v183_v17  ;;  %v293_v19 = vpop.permute.xlu1 %292 }
  0xd3   :  { %492 = vmatmul.msk.f32.vlgmr.msra.gmra.mxu3 %vm184_vm9, %v183_v17 }
 0x155   :  { %v204_v21 = vpop.f32.mrf.mxu2 }
 0x156   :  { %v205_v22 = vadd.f32 %v204_v21, %v180_v20  ;;  %v224_v23 = vpop.f32.mrf.mxu3 }
 0x157   :  { %v225_v24 = vadd.f32 %v224_v23, %v180_v20 }
 0x158   :  { %v686_v25 = vadd.f32 %v205_v22, %v663_v14 }
 0x159   :  { %v689_v26 = vadd.f32 %v225_v24, %v665_v15  ;;  %v304_v24 = vpop.permute.xlu2 %303 }
 0x15a   :  { %v229_v27 = vrot.slane %v686_v25, 4 }
 0x15b   :  { %v235_v29 = vrot.slane %v689_v26, 4 }
 0x15c   :  { %v230_v30 = vadd.f32 %v229_v27, %v686_v25 }
 0x15d   :  { %v236_v31 = vadd.f32 %v235_v29, %v689_v26 }
 0x15e   :  { %v231_v32 = vrot.slane %v230_v30, 2 }
 0x15f   :  { %v237_v33 = vrot.slane %v236_v31, 2 }
 0x160   :  { %v232_v34 = vadd.f32 %v231_v32, %v230_v30  ;;  %v301_v30 = vpop.permute.xlu0 %300 }
 0x161   :  { %v238_v35 = vadd.f32 %v237_v33, %v236_v31 }
 0x162   :  { %v233_v36 = vrot.slane %v232_v34, 1 }
 0x163   :  { %v239_v37 = vrot.slane %v238_v35, 1 }
 0x164   :  { %v234_v38 = vadd.f32 %v233_v36, %v232_v34 }
 0x165   :  { %v240_v14 = vadd.f32 %v239_v37, %v238_v35 }
 0x166   :  { %v241_v39 = vmul.f32 %v234_v38, %v671_v28 }
 0x167   :  { %v242_v15 = vmul.f32 %v240_v14, %v671_v28 }
 0x168   :  { %v243_v40 = vsub.f32 %v686_v25, %v241_v39 }
 0x169   :  { %v244_v41 = vsub.f32 %v689_v26, %v242_v15 }
 0x16a   :  { %v245_v42 = vmul.f32 %v243_v40, %v243_v40 }
 0x16b   :  { %v246_v43 = vmul.f32 %v244_v41, %v244_v41 }
 0x16c   :  { %v247_v44 = vrot.slane %v245_v42, 4 }
 0x16d   :  { %v253_v45 = vrot.slane %v246_v43, 4 }
 0x16e   :  { %v248_v46 = vadd.f32 %v247_v44, %v245_v42 }
 0x16f   :  { %v254_v47 = vadd.f32 %v253_v45, %v246_v43 }
 0x170   :  { %v249_v48 = vrot.slane %v248_v46, 2 }
 0x171   :  { %v255_v49 = vrot.slane %v254_v47, 2 }
 0x172   :  { %v250_v50 = vadd.f32 %v249_v48, %v248_v46 }
 0x173   :  { %v256_v51 = vadd.f32 %v255_v49, %v254_v47 }
 0x174   :  { %v251_v52 = vrot.slane %v250_v50, 1 }
 0x175   :  { %v257_v53 = vrot.slane %v256_v51, 1 }
 0x176   :  { %v252_v54 = vadd.f32 %v251_v52, %v250_v50 }
 0x177   :  { %v258_v55 = vadd.f32 %v257_v53, %v256_v51 }
 0x178   :  { %v259_v56 = vmul.f32 %v252_v54, %v671_v28 }
 0x179   :  { %v260_v57 = vmul.f32 %v258_v55, %v671_v28 }
 0x17a   :  { %v261_v60 = vadd.f32 1e-05, %v259_v56 }
 0x17b   :  { %v262_v61 = vadd.f32 1e-05, %v260_v57 }
 0x17c   :  { %531 = vrsqrt.f32 %v261_v60  ;;  %vm269_vm12 = vweird.f32 %v261_v60 }
 0x17d   :  { %533 = vrsqrt.f32 %v262_v61  ;;  %vm279_vm14 = vweird.f32 %v262_v61 }
 0x182   :  { %v532_v63 = vpop.eup %531 }
 0x183   :  { %v534_v0 = vpop.eup %533  ;;  %v264_v1 = vmul.f32 %v532_v63, %v261_v60  ;;  %vm270_vm10 = vweird.f32 %v532_v63 }
 0x184   :  { %v274_v2 = vmul.f32 %v534_v0, %v262_v61  ;;  %vm280_vm11 = vweird.f32 %v534_v0  ;;  %vm271_vm13 = vmor %vm269_vm12, %vm270_vm10 }
 0x185   :  { %v265_v4 = vmul.f32 %v532_v63, %v264_v1  ;;  %vm281_vm15 = vmor %vm279_vm14, %vm280_vm11  ;;  %v632_v1 = vmov 35  }
 0x186   :  { %v275_v5 = vmul.f32 %v534_v0, %v274_v2  ;;  %523 = vset.pattern.permute.xlu2 %v632_v1  ;;  %524 = vset.pattern.permute.xlu0 %v632_v1 }
 0x187   :  { %v266_v6 = vmul.f32 0.5, %v265_v4  ;;  %420 = vperm.xlu2 %523, %v655_v3  }
 0x188   :  { %v276_v7 = vmul.f32 0.5, %v275_v5 }
 0x189   :  { %v267_v8 = vsub.f32 1.5, %v266_v6 }
 0x18a   :  { %v277_v10 = vsub.f32 1.5, %v276_v7 }
 0x18b   :  { %v268_v11 = vmul.f32 %v532_v63, %v267_v8 }
 0x18c   :  { %v278_v12 = vmul.f32 %v534_v0, %v277_v10 }
 0x18d   :  { %v272_v13 = vsel %vm271_vm13, %v532_v63, %v268_v11 }
 0x18e   :  { %v282_v16 = vsel %vm281_vm15, %v534_v0, %v278_v12  ;;  %v283_v17 = vmul.f32 %v272_v13, %v243_v40 }
 0x18f   :  { %v284_v18 = vmul.f32 %v282_v16, %v244_v41 }
 0x190   :  { %v289_v20 = vmul.f32 %v287_v9, %v283_v17 }
 0x191   :  { %v290_v21 = vmul.f32 %v287_v9, %v284_v18 }
 0x192   :  { %v295_v22 = vadd.f32 %v293_v19, %v289_v20 }
 0x193   :  { %v296_v23 = vadd.f32 %v293_v19, %v290_v21 }
 0x194   :  { %v297_v27 = vmax.f32 %v295_v22, 0.0  ;;  %v413_v22 = vpop.permute.xlu2 %412 }
 0x195   :  { %v298_v29 = vmax.f32 %v296_v23, 0.0 }
 0x196   :  { %322 = vmatpush.msrb.mxu0 %v297_v27 }
 0x197   :  { %342 = vmatpush.msrb.mxu1 %v298_v29  ;;  %493 = vmatmul.msk.f32.vlgmr.msrb.gmra.mxu0 %vm184_vm9, %v304_v24 }
 0x198   :  { %494 = vmatmul.msk.f32.vlgmr.msrb.gmra.mxu1 %vm184_vm9, %v304_v24 }
 0x214   :  { %v324_v31 = vpop.f32.mrf.mxu0 }
 0x215   :  { %v325_v32 = vadd.f32 %v324_v31, %v301_v30  ;;  %v344_v33 = vpop.f32.mrf.mxu1 }
 0x216   :  { %v345_v34 = vadd.f32 %v344_v33, %v301_v30  ;;  %v421_v33 = vpop.permute.xlu2 %420 }
 0x217   :  { %v347_v35 = vadd.f32 %v325_v32, %v686_v25 }
 0x218   :  { %v348_v36 = vadd.f32 %v345_v34, %v689_v26 }
 0x219   :  { %v349_v37 = vrot.slane %v347_v35, 4 }
 0x21a   :  { %v355_v38 = vrot.slane %v348_v36, 4 }
 0x21b   :  { %v350_v14 = vadd.f32 %v349_v37, %v347_v35 }
 0x21c   :  { %v356_v39 = vadd.f32 %v355_v38, %v348_v36 }
 0x21d   :  { %v351_v15 = vrot.slane %v350_v14, 2 }
 0x21e   :  { %v357_v40 = vrot.slane %v356_v39, 2 }
 0x21f   :  { %v352_v41 = vadd.f32 %v351_v15, %v350_v14 }
 0x220   :  { %v358_v42 = vadd.f32 %v357_v40, %v356_v39 }
 0x221   :  { %v353_v43 = vrot.slane %v352_v41, 1 }
 0x222   :  { %v359_v44 = vrot.slane %v358_v42, 1 }
 0x223   :  { %v354_v45 = vadd.f32 %v353_v43, %v352_v41 }
 0x224   :  { %v360_v46 = vadd.f32 %v359_v44, %v358_v42 }
 0x225   :  { %v361_v47 = vmul.f32 %v354_v45, %v671_v28 }
 0x226   :  { %v362_v48 = vmul.f32 %v360_v46, %v671_v28 }
 0x227   :  { %v363_v49 = vsub.f32 %v347_v35, %v361_v47 }
 0x228   :  { %v364_v25 = vsub.f32 %v348_v36, %v362_v48 }
 0x229   :  { %v365_v50 = vmul.f32 %v363_v49, %v363_v49 }
 0x22a   :  { %v366_v26 = vmul.f32 %v364_v25, %v364_v25 }
 0x22b   :  { %v367_v51 = vrot.slane %v365_v50, 4 }
 0x22c   :  { %v373_v52 = vrot.slane %v366_v26, 4 }
 0x22d   :  { %v368_v53 = vadd.f32 %v367_v51, %v365_v50 }
 0x22e   :  { %v374_v54 = vadd.f32 %v373_v52, %v366_v26 }
 0x22f   :  { %v369_v55 = vrot.slane %v368_v53, 2 }
 0x230   :  { %v375_v56 = vrot.slane %v374_v54, 2 }
 0x231   :  { %v370_v57 = vadd.f32 %v369_v55, %v368_v53 }
 0x232   :  { %v376_v58 = vadd.f32 %v375_v56, %v374_v54 }
 0x233   :  { %v371_v59 = vrot.slane %v370_v57, 1 }
 0x234   :  { %v377_v60 = vrot.slane %v376_v58, 1 }
 0x235   :  { %v372_v61 = vadd.f32 %v371_v59, %v370_v57 }
 0x236   :  { %v378_v62 = vadd.f32 %v377_v60, %v376_v58 }
 0x237   :  { %v379_v63 = vmul.f32 %v372_v61, %v671_v28 }
 0x238   :  { %v380_v0 = vmul.f32 %v378_v62, %v671_v28  ;;  %v407_v28 = vpop.permute.xlu1 %406 }
 0x239   :  { %v381_v2 = vadd.f32 1e-05, %v379_v63 }
 0x23a   :  { %v382_v4 = vadd.f32 1e-05, %v380_v0 }
 0x23b   :  { %535 = vrsqrt.f32 %v381_v2  ;;  %vm389_vm2 = vweird.f32 %v381_v2 }
 0x23c   :  { %537 = vrsqrt.f32 %v382_v4  ;;  %vm399_vm4 = vweird.f32 %v382_v4 }
 0x240   :  { %v424_v31 = vpop.permute.xlu1 %423 }
 0x241   :  { %v536_v5 = vpop.eup %535 }
 0x242   :  { %v538_v6 = vpop.eup %537  ;;  %v384_v7 = vmul.f32 %v536_v5, %v381_v2  ;;  %vm390_vm0 = vweird.f32 %v536_v5 }
 0x243   :  { %v394_v8 = vmul.f32 %v538_v6, %v382_v4  ;;  %vm400_vm1 = vweird.f32 %v538_v6  ;;  %vm391_vm3 = vmor %vm389_vm2, %vm390_vm0 }
 0x244   :  { %v385_v9 = vmul.f32 %v536_v5, %v384_v7  ;;  %vm401_vm5 = vmor %vm399_vm4, %vm400_vm1 }
 0x245   :  { %v395_v10 = vmul.f32 %v538_v6, %v394_v8 }
 0x246   :  { %v386_v11 = vmul.f32 0.5, %v385_v9 }
 0x247   :  { %v396_v12 = vmul.f32 0.5, %v395_v10 }
 0x248   :  { %v387_v13 = vsub.f32 1.5, %v386_v11 }
 0x249   :  { %v397_v16 = vsub.f32 1.5, %v396_v12 }
 0x24a   :  { %v388_v17 = vmul.f32 %v536_v5, %v387_v13 }
 0x24b   :  { %v398_v3 = vmul.f32 %v538_v6, %v397_v16 }
 0x24c   :  { %v392_v18 = vsel %vm391_vm3, %v536_v5, %v388_v17 }
 0x24d   :  { %v402_v19 = vsel %vm401_vm5, %v538_v6, %v398_v3  ;;  %v403_v20 = vmul.f32 %v392_v18, %v363_v49 }
 0x24e   :  { %v404_v21 = vmul.f32 %v402_v19, %v364_v25 }
 0x24f   :  { %v409_v23 = vmul.f32 %v407_v28, %v403_v20 }
 0x250   :  { %v410_v24 = vmul.f32 %v407_v28, %v404_v21 }
 0x251   :  { %v415_v27 = vadd.f32 %v413_v22, %v409_v23 }
 0x252   :  { %v416_v29 = vadd.f32 %v413_v22, %v410_v24 }
 0x253   :  { %v417_v30 = vmax.f32 %v415_v27, 0.0 }
 0x254   :  { %v418_v32 = vmax.f32 %v416_v29, 0.0 }
 0x255   :  { %442 = vmatpush.msrb.mxu2 %v417_v30 }
 0x256   :  { %462 = vmatpush.msrb.mxu3 %v418_v32  ;;  %495 = vmatmul.msk.f32.vlgmr.msrb.gmra.mxu2 %vm184_vm9, %v424_v31 }
 0x257   :  { %496 = vmatmul.msk.f32.vlgmr.msrb.gmra.mxu3 %vm184_vm9, %v424_v31 }
 0x2d9   :  { %v444_v34 = vpop.f32.mrf.mxu2 }
 0x2da   :  { %v445_v35 = vadd.f32 %v444_v34, %v421_v33  ;;  %v464_v36 = vpop.f32.mrf.mxu3 }
 0x2db   :  { %v465_v37 = vadd.f32 %v464_v36, %v421_v33 }
 0x2dc   :  { %467 = vst [vmem:[#allocation7] sm:$0xff] %v445_v35 }
 0x2dd   :  { %468 = vst [vmem:[#allocation7 + $0x8] sm:$0xff] %v465_v37 }
 0x2de   :  { %479 = dma.vmem_to_hbm [thread:$0]  %s475_s21, 256, %s477_s24, [#allocation4]  }
 0x2df   :  { %615 = dma.done.wait [#allocation4], 256  }
 0x2e0   :  { %616 = vsyncadd [#allocation4], 4294967040 }
 0x2e1   :  { %484 = vsyncpa [#allocation3], 1 }
 0x2e2   :  { %485 = vsyncpa [#allocation6], 1 }
 0x2e3   :  { %486 = vsyncpa [#allocation4], 1 }

</bundles_post_ra>
